<compile_context>
chip_gen: v7x
topology: tpu7x:2x2x1
jax: 0.10.0
libtpu: 0.0.40
codegen_flags: <defaults>
</compile_context>

<pallas_src>
import functools

import jax
import jax.numpy as jnp
from jax.experimental import pallas as pl
from jax.experimental.pallas import tpu as pltpu


def _round_up(x, m):
    return (x + m - 1) // m * m


def _layer_norm(x, gamma, beta, h_real, eps=1e-6):
    """AllenNLP LayerNorm: gamma * (x - mean) / (std + eps) + beta (biased std).

    Single-pass statistics (E[x], E[x^2]); padded lanes of x are zero, so
    dividing the lane sums by the real hidden size gives the exact unpadded
    statistics. gamma/beta are zero on padded lanes, so padded outputs stay 0.
    """
    inv_h = 1.0 / h_real
    mean = jnp.sum(x, axis=-1, keepdims=True) * inv_h
    mean_sq = jnp.sum(x * x, axis=-1, keepdims=True) * inv_h
    var = jnp.maximum(mean_sq - mean * mean, 0.0)
    std = jnp.sqrt(var)
    inv = pl.reciprocal(std + eps, approx=True)   # EUP slot, off the VPU
    return gamma * ((x - mean) * inv) + beta


def gcn_net_kernel(x_ref, a_ref, w_ref, v_ref, out_ref, *, h_real, mm_dtype):
    layer = pl.program_id(0)

    # Layer 0: seed the resident carry. The output block index is constant
    # across the grid, so out_ref stays in VMEM for the whole kernel and is
    # flushed to HBM only once, after the last layer.
    @pl.when(layer == 0)
    def _():
        out_ref[...] = x_ref[...]

    x = out_ref[...]                        # f32 [Np, Hp] carry
    a = a_ref[...]                          # mm_dtype [Np, Np] adjacency

    w = w_ref[0]                            # mm_dtype [3, Hp, Hp]
    w1, w2, wg = w[0], w[1], w[2]

    vec = v_ref[0]                          # f32 [8, Hp] packed vector params
    b1, b2 = vec[0:1, :], vec[1:2, :]
    ff_g, ff_b = vec[2:3, :], vec[3:4, :]
    bg = vec[4:5, :]
    ln_g, ln_b = vec[5:6, :], vec[6:7, :]   # vec[7] is padding

    # FeedForward: Linear -> ReLU -> (dropout: identity in eval) -> Linear
    h1 = jnp.dot(x.astype(mm_dtype), w1,
                 preferred_element_type=jnp.float32) + b1
    h1 = jnp.maximum(h1, 0.0)
    h2 = jnp.dot(h1.astype(mm_dtype), w2,
                 preferred_element_type=jnp.float32) + b2

    # residual + feedforward layer norm
    ff = _layer_norm(h2 + x, ff_g, ff_b, h_real)

    # GCN message passing (copy_src + sum == A @ ff), then Linear + ReLU
    agg = jnp.dot(a, ff.astype(mm_dtype), preferred_element_type=jnp.float32)
    gcn = jnp.dot(agg.astype(mm_dtype), wg,
                  preferred_element_type=jnp.float32) + bg
    gcn = jnp.maximum(gcn, 0.0)

    # residual + output layer norm -> next layer's input (resident carry)
    out_ref[...] = _layer_norm(gcn + ff, ln_g, ln_b, h_real)


def gcn_layers_forward(features, adj, layer_params, *, mm_dtype=jnp.bfloat16):
    """GCN_layers.forward(g): all nlayers GCNNet blocks in one pallas_call."""
    n, h = features.shape
    n_pad = _round_up(max(n, 8), 8)
    h_pad = _round_up(max(h, 128), 128)
    num_layers = len(layer_params)
    f32 = jnp.float32

    x = jnp.zeros((n_pad, h_pad), f32).at[:n, :h].set(features.astype(f32))
    a = jnp.zeros((n_pad, n_pad), f32).at[:n, :n].set(adj.astype(f32))
    a = a.astype(mm_dtype)                  # 0/1 adjacency: exact in bf16

    def pad_w(w):
        return jnp.zeros((h_pad, h_pad), f32).at[:h, :h].set(w.astype(f32))

    def pad_v(v):
        return jnp.zeros((h_pad,), f32).at[:h].set(v.reshape(-1).astype(f32))

    w_stk, v_stk = [], []
    for p in layer_params:
        w_stk.append(jnp.stack([pad_w(p["w1"]), pad_w(p["w2"]), pad_w(p["wg"])]))
        v_stk.append(jnp.stack([
            pad_v(p["b1"]), pad_v(p["b2"]),
            pad_v(p["ff_ln_g"]), pad_v(p["ff_ln_b"]),
            pad_v(p["bg"]),
            pad_v(p["ln_g"]), pad_v(p["ln_b"]),
            jnp.zeros((h_pad,), f32),       # pad vector block to 8 sublanes
        ]))
    w_all = jnp.stack(w_stk).astype(mm_dtype)   # [L, 3, Hp, Hp]
    v_all = jnp.stack(v_stk)                    # [L, 8, Hp]  f32

    kernel = functools.partial(gcn_net_kernel, h_real=float(h),
                               mm_dtype=mm_dtype)

    # VMEM budget: resident X/out/A + double-buffered per-layer params.
    mm_bytes = jnp.dtype(mm_dtype).itemsize
    resident = 2 * n_pad * h_pad * 4 + n_pad * n_pad * mm_bytes
    per_layer = 3 * h_pad * h_pad * mm_bytes + 8 * h_pad * 4
    vmem_limit = int(min(max(2 * (resident + 2 * per_layer), 32 * 1024 * 1024),
                         60 * 1024 * 1024))

    out = pl.pallas_call(
        kernel,
        out_shape=jax.ShapeDtypeStruct((n_pad, h_pad), f32),
        grid_spec=pltpu.PrefetchScalarGridSpec(
            num_scalar_prefetch=0,
            grid=(num_layers,),
            in_specs=[
                pl.BlockSpec((n_pad, h_pad), lambda l: (0, 0)),        # X, resident
                pl.BlockSpec((n_pad, n_pad), lambda l: (0, 0)),        # A, resident
                pl.BlockSpec((1, 3, h_pad, h_pad),
                             lambda l: (l, 0, 0, 0)),                  # per-layer W
                pl.BlockSpec((1, 8, h_pad), lambda l: (l, 0, 0)),      # packed vecs
            ],
            out_specs=pl.BlockSpec((n_pad, h_pad), lambda l: (0, 0)),  # carry/output
        ),
        compiler_params=pltpu.CompilerParams(
            dimension_semantics=("arbitrary",),
            vmem_limit_bytes=vmem_limit),
    )(x, a, w_all, v_all)

    return out[:n, :h]


def init_params(key, hdim, nlayers):
    """Deterministic synthetic parameters.

    nn.Linear stores weight as (out, in) and computes x @ W.T + b; here we
    directly sample W of shape (in, out) so the kernel computes x @ W + b
    with identical semantics.
    """
    layers = []
    scale = 1.0 / jnp.sqrt(hdim)
    for _ in range(nlayers):
        key, k1, k2, k3, k4, k5, k6 = jax.random.split(key, 7)
        layers.append({
            "w1": jax.random.uniform(k1, (hdim, hdim), jnp.float32, -scale, scale),
            "b1": jax.random.uniform(k2, (1, hdim), jnp.float32, -scale, scale),
            "w2": jax.random.uniform(k3, (hdim, hdim), jnp.float32, -scale, scale),
            "b2": jax.random.uniform(k4, (1, hdim), jnp.float32, -scale, scale),
            "ff_ln_g": jnp.ones((1, hdim), jnp.float32),
            "ff_ln_b": jnp.zeros((1, hdim), jnp.float32),
            "wg": jax.random.uniform(k5, (hdim, hdim), jnp.float32, -scale, scale),
            "bg": jax.random.uniform(k6, (1, hdim), jnp.float32, -scale, scale),
            "ln_g": jnp.ones((1, hdim), jnp.float32),
            "ln_b": jnp.zeros((1, hdim), jnp.float32),
        })
    return layers


def _reference_forward(features, adj, layer_params, eps=1e-6):
    """Pure-JAX f32 reference of GCNNet.forward (eval mode)."""
    out = features
    for p in layer_params:
        h1 = jnp.maximum(out @ p["w1"] + p["b1"], 0.0)
        h2 = h1 @ p["w2"] + p["b2"]
        z = h2 + out
        m = jnp.mean(z, -1, keepdims=True)
        s = jnp.sqrt(jnp.mean((z - m) ** 2, -1, keepdims=True))
        ff = p["ff_ln_g"] * (z - m) / (s + eps) + p["ff_ln_b"]
        agg = adj @ ff
        gcn = jnp.maximum(agg @ p["wg"] + p["bg"], 0.0)
        z2 = gcn + ff
        m2 = jnp.mean(z2, -1, keepdims=True)
        s2 = jnp.sqrt(jnp.mean((z2 - m2) ** 2, -1, keepdims=True))
        out = p["ln_g"] * (z2 - m2) / (s2 + eps) + p["ln_b"]
    return out


if __name__ == "__main__":
    N, HDIM, NLAYERS = 8, 32, 2
    key = jax.random.PRNGKey(0)
    k_feat, k_param = jax.random.split(key)

    # Node features (one graph of N "sentence" nodes).
    features = jax.random.normal(k_feat, (N, HDIM), jnp.float32)

    # Dense adjacency: fully-connected graph with self-loops (typical of the
    # sentence-graph construction in transform_sent_rep).
    adj = jnp.ones((N, N), jnp.float32)

    params = init_params(k_param, HDIM, NLAYERS)

    out = gcn_layers_forward(features, adj, params)
    out = jax.block_until_ready(out)
    assert out.shape == (N, HDIM)
    assert bool(jnp.all(jnp.isfinite(out))), "non-finite output"

    # Loose check vs f32 reference (kernel uses bf16 matmul operands and an
    # approx EUP reciprocal in the layer norms).
    ref = _reference_forward(features, adj, params)
    err = float(jnp.max(jnp.abs(out - ref)))
    assert err < 0.25, f"kernel/reference mismatch: max abs err {err}"

    print("KERNEL_OK")
</pallas_src>

<mosaic_0001>
module attributes {stable_mosaic.version = 11 : i64} {
  func.func @gcn_net_kernel(%arg0: i32, %arg1: memref<8x128xf32, #tpu.memory_space<vmem>>, %arg2: memref<8x8xbf16, #tpu.memory_space<vmem>>, %arg3: memref<1x3x128x128xbf16, #tpu.memory_space<vmem>>, %arg4: memref<1x8x128xf32, #tpu.memory_space<vmem>>, %arg5: memref<8x128xf32, #tpu.memory_space<vmem>>) attributes {dimension_semantics = [#tpu.dimension_semantics<arbitrary>], iteration_bounds = array<i64: 2>, scalar_prefetch = 0 : i64, scratch_operands = 0 : i64, tpu.core_type = #tpu.core_type<tc>, window_params = [{pipeline_mode = #tpu.pipeline_mode<synchronous>, transform_indices = @transform_0, window_bounds = array<i64: 8, 128>}, {pipeline_mode = #tpu.pipeline_mode<synchronous>, transform_indices = @transform_1, window_bounds = array<i64: 8, 8>}, {transform_indices = @transform_2, window_bounds = array<i64: 1, 3, 128, 128>}, {transform_indices = @transform_3, window_bounds = array<i64: 1, 8, 128>}, {pipeline_mode = #tpu.pipeline_mode<synchronous>, transform_indices = @transform_4, window_bounds = array<i64: 8, 128>}]} {
    %c0_i32 = arith.constant 0 : i32
    %0 = arith.cmpi eq, %arg0, %c0_i32 : i32
    %1 = arith.extui %0 : i1 to i32
    %c0_i32_0 = arith.constant 0 : i32
    %2 = arith.cmpi ne, %1, %c0_i32_0 : i32
    scf.if %2 {
      %c0_30 = arith.constant 0 : index
      %c0_31 = arith.constant 0 : index
      %93 = vector.load %arg1[%c0_30, %c0_31] : memref<8x128xf32, #tpu.memory_space<vmem>>, vector<8x128xf32>
      %c0_32 = arith.constant 0 : index
      %c0_33 = arith.constant 0 : index
      %94 = vector.load %arg5[%c0_32, %c0_33] : memref<8x128xf32, #tpu.memory_space<vmem>>, vector<8x128xf32>
      tpu.vector_store %arg5[%c0_32, %c0_33], %93 {strides = array<i32>} : memref<8x128xf32, #tpu.memory_space<vmem>>, vector<8x128xf32>,
    } else {
    }
    %c0 = arith.constant 0 : index
    %c0_1 = arith.constant 0 : index
    %3 = vector.load %arg5[%c0, %c0_1] : memref<8x128xf32, #tpu.memory_space<vmem>>, vector<8x128xf32>
    %c0_2 = arith.constant 0 : index
    %c0_3 = arith.constant 0 : index
    %4 = vector.load %arg2[%c0_2, %c0_3] : memref<8x8xbf16, #tpu.memory_space<vmem>>, vector<8x8xbf16>
    %c0_4 = arith.constant 0 : index
    %c0_5 = arith.constant 0 : index
    %c0_6 = arith.constant 0 : index
    %c0_7 = arith.constant 0 : index
    %5 = vector.load %arg3[%c0_4, %c0_5, %c0_6, %c0_7] : memref<1x3x128x128xbf16, #tpu.memory_space<vmem>>, vector<1x3x128x128xbf16>
    %6 = vector.shape_cast %5 : vector<1x3x128x128xbf16> to vector<3x128x128xbf16>
    %7 = vector.extract_strided_slice %6 {offsets = [0, 0, 0], sizes = [1, 128, 128], strides = [1, 1, 1]} : vector<3x128x128xbf16> to vector<1x128x128xbf16>
    %8 = vector.shape_cast %7 : vector<1x128x128xbf16> to vector<128x128xbf16>
    %9 = vector.extract_strided_slice %6 {offsets = [1, 0, 0], sizes = [1, 128, 128], strides = [1, 1, 1]} : vector<3x128x128xbf16> to vector<1x128x128xbf16>
    %10 = vector.shape_cast %9 : vector<1x128x128xbf16> to vector<128x128xbf16>
    %11 = vector.extract_strided_slice %6 {offsets = [2, 0, 0], sizes = [1, 128, 128], strides = [1, 1, 1]} : vector<3x128x128xbf16> to vector<1x128x128xbf16>
    %12 = vector.shape_cast %11 : vector<1x128x128xbf16> to vector<128x128xbf16>
    %c0_8 = arith.constant 0 : index
    %c0_9 = arith.constant 0 : index
    %c0_10 = arith.constant 0 : index
    %13 = vector.load %arg4[%c0_8, %c0_9, %c0_10] : memref<1x8x128xf32, #tpu.memory_space<vmem>>, vector<1x8x128xf32>
    %14 = vector.shape_cast %13 : vector<1x8x128xf32> to vector<8x128xf32>
    %15 = vector.extract_strided_slice %14 {offsets = [0, 0], sizes = [1, 128], strides = [1, 1]} : vector<8x128xf32> to vector<1x128xf32>
    %16 = vector.extract_strided_slice %14 {offsets = [1, 0], sizes = [1, 128], strides = [1, 1]} : vector<8x128xf32> to vector<1x128xf32>
    %17 = vector.extract_strided_slice %14 {offsets = [2, 0], sizes = [1, 128], strides = [1, 1]} : vector<8x128xf32> to vector<1x128xf32>
    %18 = vector.extract_strided_slice %14 {offsets = [3, 0], sizes = [1, 128], strides = [1, 1]} : vector<8x128xf32> to vector<1x128xf32>
    %19 = vector.extract_strided_slice %14 {offsets = [4, 0], sizes = [1, 128], strides = [1, 1]} : vector<8x128xf32> to vector<1x128xf32>
    %20 = vector.extract_strided_slice %14 {offsets = [5, 0], sizes = [1, 128], strides = [1, 1]} : vector<8x128xf32> to vector<1x128xf32>
    %21 = vector.extract_strided_slice %14 {offsets = [6, 0], sizes = [1, 128], strides = [1, 1]} : vector<8x128xf32> to vector<1x128xf32>
    %22 = arith.truncf %3 : vector<8x128xf32> to vector<8x128xbf16>
    %cst = arith.constant dense<0.000000e+00> : vector<8x128xf32>
    %23 = tpu.matmul %22, %8, %cst {dimension_numbers = #tpu.dot_dimension_numbers<[1], [0], [0], [1], [0, 0, 1, 1], [], []>} : vector<8x128xbf16>, vector<128x128xbf16>, vector<8x128xf32> -> vector<8x128xf32>
    %24 = vector.broadcast %15 : vector<1x128xf32> to vector<8x128xf32>
    %25 = arith.addf %23, %24 : vector<8x128xf32>
    %cst_11 = arith.constant 0.000000e+00 : f32
    %26 = vector.broadcast %cst_11 : f32 to vector<8x128xf32>
    %27 = arith.maximumf %25, %26 : vector<8x128xf32>
    %28 = arith.truncf %27 : vector<8x128xf32> to vector<8x128xbf16>
    %cst_12 = arith.constant dense<0.000000e+00> : vector<8x128xf32>
    %29 = tpu.matmul %28, %10, %cst_12 {dimension_numbers = #tpu.dot_dimension_numbers<[1], [0], [0], [1], [0, 0, 1, 1], [], []>} : vector<8x128xbf16>, vector<128x128xbf16>, vector<8x128xf32> -> vector<8x128xf32>
    %30 = vector.broadcast %16 : vector<1x128xf32> to vector<8x128xf32>
    %31 = arith.addf %29, %30 : vector<8x128xf32>
    %32 = arith.addf %31, %3 : vector<8x128xf32>
    %cst_13 = arith.constant dense<0.000000e+00> : vector<8xf32>
    %33 = vector.multi_reduction <add>, %32, %cst_13 [1] : vector<8x128xf32> to vector<8xf32>
    %34 = vector.shape_cast %33 : vector<8xf32> to vector<8x1xf32>
    %cst_14 = arith.constant 3.125000e-02 : f32
    %35 = vector.broadcast %cst_14 : f32 to vector<8x1xf32>
    %36 = arith.mulf %34, %35 : vector<8x1xf32>
    %37 = arith.mulf %32, %32 : vector<8x128xf32>
    %cst_15 = arith.constant dense<0.000000e+00> : vector<8xf32>
    %38 = vector.multi_reduction <add>, %37, %cst_15 [1] : vector<8x128xf32> to vector<8xf32>
    %39 = vector.shape_cast %38 : vector<8xf32> to vector<8x1xf32>
    %cst_16 = arith.constant 3.125000e-02 : f32
    %40 = vector.broadcast %cst_16 : f32 to vector<8x1xf32>
    %41 = arith.mulf %39, %40 : vector<8x1xf32>
    %42 = arith.mulf %36, %36 : vector<8x1xf32>
    %43 = arith.subf %41, %42 : vector<8x1xf32>
    %cst_17 = arith.constant 0.000000e+00 : f32
    %44 = vector.broadcast %cst_17 : f32 to vector<8x1xf32>
    %45 = arith.maximumf %43, %44 : vector<8x1xf32>
    %46 = math.sqrt %45 : vector<8x1xf32>
    %cst_18 = arith.constant 9.99999997E-7 : f32
    %47 = vector.broadcast %cst_18 : f32 to vector<8x1xf32>
    %48 = arith.addf %46, %47 : vector<8x1xf32>
    %49 = tpu.reciprocal %48 {approx = true} : vector<8x1xf32> -> vector<8x1xf32>
    %50 = vector.broadcast %36 : vector<8x1xf32> to vector<8x128xf32>
    %51 = arith.subf %32, %50 : vector<8x128xf32>
    %52 = vector.broadcast %49 : vector<8x1xf32> to vector<8x128xf32>
    %53 = arith.mulf %51, %52 : vector<8x128xf32>
    %54 = vector.broadcast %17 : vector<1x128xf32> to vector<8x128xf32>
    %55 = arith.mulf %54, %53 : vector<8x128xf32>
    %56 = vector.broadcast %18 : vector<1x128xf32> to vector<8x128xf32>
    %57 = arith.addf %55, %56 : vector<8x128xf32>
    %58 = arith.truncf %57 : vector<8x128xf32> to vector<8x128xbf16>
    %cst_19 = arith.constant dense<0.000000e+00> : vector<8x128xf32>
    %59 = tpu.matmul %4, %58, %cst_19 {dimension_numbers = #tpu.dot_dimension_numbers<[1], [0], [0], [1], [0, 0, 1, 1], [], []>} : vector<8x8xbf16>, vector<8x128xbf16>, vector<8x128xf32> -> vector<8x128xf32>
    %60 = arith.truncf %59 : vector<8x128xf32> to vector<8x128xbf16>
    %cst_20 = arith.constant dense<0.000000e+00> : vector<8x128xf32>
    %61 = tpu.matmul %60, %12, %cst_20 {dimension_numbers = #tpu.dot_dimension_numbers<[1], [0], [0], [1], [0, 0, 1, 1], [], []>} : vector<8x128xbf16>, vector<128x128xbf16>, vector<8x128xf32> -> vector<8x128xf32>
    %62 = vector.broadcast %19 : vector<1x128xf32> to vector<8x128xf32>
    %63 = arith.addf %61, %62 : vector<8x128xf32>
    %cst_21 = arith.constant 0.000000e+00 : f32
    %64 = vector.broadcast %cst_21 : f32 to vector<8x128xf32>
    %65 = arith.maximumf %63, %64 : vector<8x128xf32>
    %66 = arith.addf %65, %57 : vector<8x128xf32>
    %cst_22 = arith.constant dense<0.000000e+00> : vector<8xf32>
    %67 = vector.multi_reduction <add>, %66, %cst_22 [1] : vector<8x128xf32> to vector<8xf32>
    %68 = vector.shape_cast %67 : vector<8xf32> to vector<8x1xf32>
    %cst_23 = arith.constant 3.125000e-02 : f32
    %69 = vector.broadcast %cst_23 : f32 to vector<8x1xf32>
    %70 = arith.mulf %68, %69 : vector<8x1xf32>
    %71 = arith.mulf %66, %66 : vector<8x128xf32>
    %cst_24 = arith.constant dense<0.000000e+00> : vector<8xf32>
    %72 = vector.multi_reduction <add>, %71, %cst_24 [1] : vector<8x128xf32> to vector<8xf32>
    %73 = vector.shape_cast %72 : vector<8xf32> to vector<8x1xf32>
    %cst_25 = arith.constant 3.125000e-02 : f32
    %74 = vector.broadcast %cst_25 : f32 to vector<8x1xf32>
    %75 = arith.mulf %73, %74 : vector<8x1xf32>
    %76 = arith.mulf %70, %70 : vector<8x1xf32>
    %77 = arith.subf %75, %76 : vector<8x1xf32>
    %cst_26 = arith.constant 0.000000e+00 : f32
    %78 = vector.broadcast %cst_26 : f32 to vector<8x1xf32>
    %79 = arith.maximumf %77, %78 : vector<8x1xf32>
    %80 = math.sqrt %79 : vector<8x1xf32>
    %cst_27 = arith.constant 9.99999997E-7 : f32
    %81 = vector.broadcast %cst_27 : f32 to vector<8x1xf32>
    %82 = arith.addf %80, %81 : vector<8x1xf32>
    %83 = tpu.reciprocal %82 {approx = true} : vector<8x1xf32> -> vector<8x1xf32>
    %84 = vector.broadcast %70 : vector<8x1xf32> to vector<8x128xf32>
    %85 = arith.subf %66, %84 : vector<8x128xf32>
    %86 = vector.broadcast %83 : vector<8x1xf32> to vector<8x128xf32>
    %87 = arith.mulf %85, %86 : vector<8x128xf32>
    %88 = vector.broadcast %20 : vector<1x128xf32> to vector<8x128xf32>
    %89 = arith.mulf %88, %87 : vector<8x128xf32>
    %90 = vector.broadcast %21 : vector<1x128xf32> to vector<8x128xf32>
    %91 = arith.addf %89, %90 : vector<8x128xf32>
    %c0_28 = arith.constant 0 : index
    %c0_29 = arith.constant 0 : index
    %92 = vector.load %arg5[%c0_28, %c0_29] : memref<8x128xf32, #tpu.memory_space<vmem>>, vector<8x128xf32>
    tpu.vector_store %arg5[%c0_28, %c0_29], %91 {strides = array<i32>} : memref<8x128xf32, #tpu.memory_space<vmem>>, vector<8x128xf32>,
    return
  }
  func.func @transform_0(%arg0: i32) -> (i32, i32) {
    %c0_i32 = arith.constant 0 : i32
    %c0_i32_0 = arith.constant 0 : i32
    %c0_i32_1 = arith.constant 0 : i32
    return %c0_i32, %c0_i32_0 : i32, i32
  }
  func.func @transform_1(%arg0: i32) -> (i32, i32) {
    %c0_i32 = arith.constant 0 : i32
    %c0_i32_0 = arith.constant 0 : i32
    %c0_i32_1 = arith.constant 0 : i32
    return %c0_i32, %c0_i32_0 : i32, i32
  }
  func.func @transform_2(%arg0: i32) -> (i32, i32, i32, i32) {
    %c0_i32 = arith.constant 0 : i32
    %c0_i32_0 = arith.constant 0 : i32
    %c0_i32_1 = arith.constant 0 : i32
    %c0_i32_2 = arith.constant 0 : i32
    return %arg0, %c0_i32, %c0_i32_0, %c0_i32_1 : i32, i32, i32, i32
  }
  func.func @transform_3(%arg0: i32) -> (i32, i32, i32) {
    %c0_i32 = arith.constant 0 : i32
    %c0_i32_0 = arith.constant 0 : i32
    %c0_i32_1 = arith.constant 0 : i32
    return %arg0, %c0_i32, %c0_i32_0 : i32, i32, i32
  }
  func.func @transform_4(%arg0: i32) -> (i32, i32) {
    %c0_i32 = arith.constant 0 : i32
    %c0_i32_0 = arith.constant 0 : i32
    %c0_i32_1 = arith.constant 0 : i32
    return %c0_i32, %c0_i32_0 : i32, i32
  }
}

</mosaic_0001>

<bundles_post_ra>
// kernel: tpu_custom_call.1
= control target key start
LH: loop header
LB: loop body
LE: loop exit
PB: predicated region body
PF: predicated region fallthrough
CT: control target
= control target key end

     0   :  { %9 = vsyncpa [#allocation3], 0  ;;  %s1595_s0 = inlined_call_operand.hbm [shape: f32[8,128], index: 0, kind: input, shape index: {}]   ;;  %s1596_s1 = inlined_call_operand.hbm [shape: bf16[8,8], index: 1, kind: input, shape index: {}]   ;;  %s1597_s2 = inlined_call_operand.hbm [shape: bf16[2,3,128,128], index: 2, kind: input, shape index: {}]   ;;  %s1598_s3 = inlined_call_operand.hbm [shape: f32[2,8,128], index: 3, kind: input, shape index: {}]   ;;  %s1599_s4 = inlined_call_operand.hbm [shape: f32[8,128], index: 4, kind: output, shape index: {}]  }
   0x1   :  { %10 = vsyncpa [#allocation6], 0 }
   0x2   :  { %11 = vsyncpa [#allocation4], 0  ;;  %s1282_s15 = smov 0   ;;  %s1284_s16 = smov 0  }
   0x3   :  { %s1286_s17 = smov 0   ;;  %s1288_s18 = smov 0  }
   0x4 LB: > { %s1301_s19 = sadd.s32 4294967295, %s1246_s18   ;;  %s1304_s20 = sadd.s32 1, %s1246_s18   ;;  %s1246_s18 = sphi %s1288_s18, %s1628_s18   ;;  %s1242_s17 = sphi %s1286_s17, %s1627_s17   ;;  %s1238_s16 = sphi %s1284_s16, %s1626_s16   ;;  %s1234_s15 = sphi %s1282_s15, %s1625_s15  }
   0x5   : > { %s63_s21 = ssub.s32 %s1246_s18, %s1304_s20  ;;  %s66_s22 = sadd.s32 1, %s1242_s17 }
   0x6   : > { %p64_p0 = scmp.eq.s32.totalorder %s63_s21, 0  ;;  %p73_p1 = scmp.ne.s32.totalorder %s1242_s17, %s1238_s16 }
   0x7   : > { %p74_p2 = scmp.eq.s32.totalorder %s1246_s18, 0  ;;  %p79_p3 = scmp.ne.s32.totalorder %s1238_s16, %s1234_s15 }
   0x8   : > { %s1314_s23 = scalar_select %p64_p0, %s1242_s17, %s66_s22  }
   0x9   : > { %p1316_p4 = por %p74_p2, %p73_p1  ;;  %p1600_p5 = scmp.eq.s32.totalorder %s1301_s19, 0 }
   0xa   : > { %p811_p6 = scmp.ge.s32.totalorder %s1246_s18, 1  ;;  %p137_p7 = scmp.lt.s32.totalorder %s1246_s18, 3 }
   0xb   : > { %p1325_p8 = por %p1600_p5, %p79_p3  ;;  %s1248_s27 = smov [#allocation2]  }
   0xc   : > { %p1330_p10 = pnand %p811_p6, %p137_p7  ;;  %s150_s28 = sshll.u32 %s1248_s27, 4  ;;  %s151_s28 = int_to_ptr.vmem [resolvable:$true] %s150_s28 }
   0xd   : > { %s1608_s25 = scalar_select %p1325_p8, 1, 0 }
   0xe   : > { %s1609_s26 = scalar_select %p1330_p10, 1, 0 }
   0xf   : > { %p966_p11 = pneg %p1330_p10  ;;  %p982_p12 = scmp.lt.s32.totalorder %s1246_s18, 2 }
  0x10   : > { %s172_s29 = sand.u32 1, %s1246_s18   ;;  %s174_s6 = sand.u32 1, %s1242_s17  }
  0x11   : > { %p1340_p13 = pnand %p966_p11, %p1600_p5  ;;  %p1346_p0 = pnand %p982_p12, %p1316_p4 }
  0x12   : > { %s947_s7 = smul.u32 192, %s174_s6  ;;  %s1058_s10 = scalar_lea.hbm %s1595_s0, 128 }
  0x13   : > { %s1611_s5 = scalar_select %p1346_p0, 1, 0 }
  0x14   : > { %p1059_p1 = scmp.ne.s32.totalorder %s1595_s0, %s1058_s10  ;;  %p1604_p2 = pneg %p1340_p13 }
  0x15   : > { %p1065_p6 = scmp.lt.u32.totalorder %s1058_s10, %s1595_s0 }
  0x16   : > { %p1061_p3 = pnand %p1604_p2, %p1059_p1 }
  0x18   : > { %p1062_p4 = pneg %p1061_p3 }
  0x1a   : > { %p1067_p7 = pnand %p1065_p6, %p1062_p4 }
  0x1c   : > { %1070 = shalt.err (!%p1067_p7)
}
  0x1d   : > { %s1071_s15 = scalar_lea.vmem %s151_s28, 128  ;;  %p1079_p5 = scmp.lt.s32.totalorder %s151_s28, %s151_s28 }
  0x1e   : > { %p1072_p11 = scmp.ne.s32.totalorder %s151_s28, %s1071_s15  ;;  %p1080_p8 = scmp.lt.s32.totalorder %s1071_s15, %s1071_s15 }
  0x20   : > { %p1074_p12 = pnand %p1072_p11, %p1604_p2  ;;  %p1081_p10 = por %p1080_p8, %p1079_p5 }
  0x22   : > { %p1075_p9 = pneg %p1074_p12 }
  0x24   : > { %p1082_p0 = pnand %p1081_p10, %p1075_p9 }
  0x26   : > { %1085 = shalt.err (!%p1082_p0)
}
  0x27   : > { %969 = dma.hbm_to_vmem [thread:$0]  (!%p1340_p13), %s1595_s0, 128, %s151_s28, [#allocation3]  }
  0x28   : > { %s948_s24 = smul.u32 3072, %s1246_s18  ;;  %s176_s27 = scalar_lea.vmem [#allocation7], %s947_s7 }
  0x29   : > { %s183_s8 = sshll.u32 %s176_s27, 4  ;;  %s1383_s12 = scalar_lea.sflag [#allocation3], %s172_s29  ;;  %s1376_s8 = int_to_ptr.vmem [resolvable:$true] %s183_s8 }
  0x2a   : > { %s1381_s11 = scalar_lea.hbm %s1597_s2, %s948_s24  ;;  %p1612_p8 = scmp.ne.s32.totalorder %s1611_s5, 0 }
  0x2b   : > { %s1086_s13 = scalar_lea.hbm %s1381_s11, 3072  ;;  %s1091_s14 = scalar_lea.hbm %s1597_s2, 6144 }
  0x2c   : > { %p1087_p5 = scmp.ne.s32.totalorder %s1381_s11, %s1086_s13  ;;  %p1605_p9 = pneg %p1612_p8 }
  0x2d   : > { %p1092_p1 = scmp.lt.u32.totalorder %s1381_s11, %s1597_s2  ;;  %p1093_p3 = scmp.lt.u32.totalorder %s1091_s14, %s1086_s13 }
  0x2e   : > { %p1089_p10 = pnand %p1605_p9, %p1087_p5  ;;  %p1095_p6 = scmp.lt.u32.totalorder %s1086_s13, %s1381_s11 }
  0x2f   : > { %p1094_p4 = por %p1093_p3, %p1092_p1 }
  0x30   : > { %p1090_p0 = pneg %p1089_p10 }
  0x31   : > { %p1096_p7 = por %p1095_p6, %p1094_p4 }
  0x33   : > { %p1097_p11 = pnand %p1096_p7, %p1090_p0 }
  0x35   : > { %1100 = shalt.err (!%p1097_p11)
}
  0x36   : > { %s1101_s29 = scalar_lea.vmem %s1376_s8, 3072  ;;  %s1249_s22 = smov [#allocation7]  }
  0x37   : > { %p1102_p12 = scmp.ne.s32.totalorder %s1376_s8, %s1101_s29  ;;  %s1106_s24 = sshll.u32 %s1249_s22, 4  ;;  %s1107_s24 = int_to_ptr.vmem [resolvable:$false] %s1106_s24 }
  0x38   : > { %s1108_s27 = scalar_lea.vmem %s1107_s24, 6144  ;;  %p1109_p2 = scmp.lt.s32.totalorder %s1376_s8, %s1107_s24 }
  0x39   : > { %p1104_p5 = pnand %p1102_p12, %p1605_p9  ;;  %p1110_p1 = scmp.lt.s32.totalorder %s1108_s27, %s1101_s29 }
  0x3b   : > { %p1105_p10 = pneg %p1104_p5  ;;  %p1111_p3 = por %p1110_p1, %p1109_p2 }
  0x3d   : > { %p1112_p4 = pnand %p1111_p3, %p1105_p10 }
  0x3f   : > { %1115 = shalt.err (!%p1112_p4)
}
  0x40   : > { %s1250_s9 = smov 64   ;;  %s1251_s10 = smov 4  }
  0x41   : > { %976 = dma.hbm_to_vmem [thread:$0]  (!%p1612_p8), %s1381_s11, 3072, %s1376_s8, %s1383_s12, %s1250_s9, %s1250_s9, %s1251_s10  }
  0x42   : > { %s816_s13 = sshll.u32 %s174_s6, 3  ;;  %s1252_s28 = smov [#allocation5]  }
  0x43   : > { %s161_s7 = sshll.u32 %s1252_s28, 4  ;;  %s817_s14 = sshll.u32 %s1246_s18, 7  ;;  %s162_s7 = int_to_ptr.vmem [resolvable:$true] %s161_s7 }
  0x44   : > { %s1116_s29 = scalar_lea.hbm %s1596_s1, 64  ;;  %p1613_p0 = pneg %p1340_p13 }
  0x45   : > { %p1117_p2 = scmp.ne.s32.totalorder %s1596_s1, %s1116_s29  ;;  %p1123_p11 = scmp.lt.u32.totalorder %s1116_s29, %s1596_s1 }
  0x47   : > { %p1119_p6 = pnand %p1117_p2, %p1613_p0 }
  0x49   : > { %p1120_p7 = pneg %p1119_p6 }
  0x4b   : > { %p1125_p12 = pnand %p1123_p11, %p1120_p7 }
  0x4d   : > { %1128 = shalt.err (!%p1125_p12)
}
  0x4e   : > { %s1129_s6 = scalar_lea.vmem %s162_s7, 64  ;;  %p1614_p10 = pmov %p1613_p0 }
  0x4f   : > { %p1130_p5 = scmp.ne.s32.totalorder %s162_s7, %s1129_s6  ;;  %p1137_p4 = scmp.lt.s32.totalorder %s162_s7, %s162_s7 }
  0x50   : > { %p1138_p9 = scmp.lt.s32.totalorder %s1129_s6, %s1129_s6 }
  0x51   : > { %p1132_p1 = pnand %p1130_p5, %p1614_p10 }
  0x52   : > { %p1139_p8 = por %p1138_p9, %p1137_p4 }
  0x53   : > { %p1133_p3 = pneg %p1132_p1 }
  0x55   : > { %p1140_p0 = pnand %p1139_p8, %p1133_p3 }
  0x57   : > { %1143 = shalt.err (!%p1140_p0)
}
  0x58   : > { %972 = dma.hbm_to_vmem [thread:$0]  (!%p1340_p13), %s1596_s1, 64, %s162_s7, [#allocation6]  }
  0x59   : > { %s1437_s28 = scalar_lea.hbm %s1598_s3, %s817_s14  ;;  %s197_s15 = scalar_lea.vmem [#allocation8], %s816_s13 }
  0x5a   : > { %s204_s21 = sshll.u32 %s197_s15, 4  ;;  %s1144_s29 = scalar_lea.hbm %s1437_s28, 128  ;;  %s205_s21 = int_to_ptr.vmem [resolvable:$true] %s204_s21 }
  0x5b   : > { %p1145_p8 = scmp.ne.s32.totalorder %s1437_s28, %s1144_s29  ;;  %p1615_p9 = scmp.ne.s32.totalorder %s1611_s5, 0 }
  0x5c   : > { %s1149_s22 = scalar_lea.hbm %s1598_s3, 256  ;;  %p1150_p13 = scmp.lt.u32.totalorder %s1437_s28, %s1598_s3 }
  0x5d   : > { %p1616_p2 = pneg %p1615_p9  ;;  %p1151_p11 = scmp.lt.u32.totalorder %s1149_s22, %s1144_s29 }
  0x5e   : > { %p1153_p5 = scmp.lt.u32.totalorder %s1144_s29, %s1437_s28 }
  0x5f   : > { %p1147_p6 = pnand %p1145_p8, %p1616_p2  ;;  %p1152_p12 = por %p1151_p11, %p1150_p13 }
  0x61   : > { %p1148_p7 = pneg %p1147_p6  ;;  %p1154_p10 = por %p1153_p5, %p1152_p12 }
  0x63   : > { %p1155_p1 = pnand %p1154_p10, %p1148_p7 }
  0x65   : > { %1158 = shalt.err (!%p1155_p1)
}
  0x66   : > { %s1159_s13 = scalar_lea.vmem %s205_s21, 128  ;;  %p1617_p4 = pmov %p1616_p2 }
  0x67   : > { %p1160_p3 = scmp.ne.s32.totalorder %s205_s21, %s1159_s13  ;;  %s1253_s27 = smov [#allocation8]  }
  0x68   : > { %s1164_s8 = sshll.u32 %s1253_s27, 4  ;;  %s1165_s8 = int_to_ptr.vmem [resolvable:$false] %s1164_s8 }
  0x69   : > { %p1162_p0 = pnand %p1160_p3, %p1617_p4  ;;  %s1166_s6 = scalar_lea.vmem %s1165_s8, 256 }
  0x6a   : > { %p1167_p2 = scmp.lt.s32.totalorder %s205_s21, %s1165_s8  ;;  %p1168_p6 = scmp.lt.s32.totalorder %s1166_s6, %s1159_s13 }
  0x6b   : > { %p1163_p8 = pneg %p1162_p0 }
  0x6c   : > { %p1169_p11 = por %p1168_p6, %p1167_p2 }
  0x6e   : > { %p1170_p13 = pnand %p1169_p11, %p1163_p8 }
  0x70   : > { %1173 = shalt.err (!%p1170_p13)
}
  0x71   : > { %979 = dma.hbm_to_vmem [thread:$0]  (!%p1615_p9), %s1437_s28, 128, %s205_s21, %s1383_s12  }
  0x72   : > { %p1618_p7 = scmp.ne.s32.totalorder %s1609_s26, 0 }
  0x73   : > { %p1619_p12 = scmp.eq.s32.totalorder (!%p1618_p7), %s1301_s19, 0 }
  0x74   : > { %213 = sbr.rel (%p1618_p7) target bundleno = 1434 (0x59a), region = 36 }
  0x7b   : > { %1217 = dma.done.wait (%p1619_p12), [#allocation3], 128   ;;  %p1620_p5 = pmov %p1619_p12 }
  0x7d   : > { %1219 = vsyncadd (%p1620_p5), [#allocation3], 4294967168  ;;  %p1621_p10 = pmov %p1620_p5 }
  0x7e   : > { %p1622_p1 = pmov %p1620_p5 }
  0x7f   : > { %1221 = dma.done.wait (%p1621_p10), [#allocation6], 64  }
  0x80   : > { %1223 = vsyncadd (%p1622_p1), [#allocation6], 4294967232  ;;  %s223_s5 = sand.u32 1, %s1301_s19   ;;  %s225_s12 = sand.u32 1, %s1238_s16  }
  0x81   : > { %s949_s18 = smul.u32 192, %s225_s12  ;;  %s224_s26 = scalar_lea.sflag [#allocation3], %s223_s5 }
  0x82   : > { %p1623_p9 = scmp.ne.s32.totalorder %s1608_s25, 0 }
  0x83   : > { %s1471_s11 = scalar_lea.vmem [#allocation7], %s949_s18 }
  0x84   : > { %1225 = dma.done.wait (%p1623_p9), %s224_s26, 3200  }
  0x85   : > { %1227 = vsyncadd (%p1623_p9), %s224_s26, 4294964096  ;;  %s1477_s9 = sshll.u32 %s225_s12, 3  ;;  %p1624_p3 = scmp.ne.s32.totalorder %s1301_s19, 0 }
  0x86   : > { %s236_s10 = scalar_lea.vmem [#allocation8], %s1477_s9  ;;  %v266_v0 = vld [vmem:[#allocation2] sm:$0xff] (!%p1624_p3) }
  0x87   : > { %265 = sbr.rel (%p1624_p3) target bundleno = 142 (0x8e), region = 56  ;;  %267 = vst [vmem:[#allocation9] sm:$0xff] (!%p1624_p3), %v266_v0 }
  0x8e PF: > { %v1026_v1 = vld [vmem:[%s1471_s11] sm:$0xff]   ;;  %v1254_v2 = vmov 0.0   ;;  %v1027_v3 = vld [vmem:[%s1471_s11 + $0x8] sm:$0xff]   ;;  %vm1255_vm0 = vmmov 0   ;;  %v1028_v4 = vld [vmem:[%s1471_s11 + $0x10] sm:$0xff]   ;;  %v320_v20 = vlaneseq  ;;  %vm543_vm3 = vcmask 1043456  }
  0x8f   : > { %881 = vmatprep.subr.bf16.mxu0 %v1254_v2  ;;  %901 = vmatprep.subr.bf16.mxu1 %v1254_v2  ;;  %v1034_v5 = vld [vmem:[%s1471_s11 + $0x40] sm:$0xff]   ;;  %v1029_v6 = vld [vmem:[%s1471_s11 + $0x18] sm:$0xff]   ;;  %v1035_v7 = vld [vmem:[%s1471_s11 + $0x48] sm:$0xff]   ;;  %vm539_vm4 = vcmask 64512   ;;  %s1256_s25 = smov [#allocation9]   ;;  %p985_p4 = scmp.eq.s32.totalorder %s1301_s19, 1 }
  0x90   : > { %882 = vmatpush3.bf16.msra.mxu0 %v1026_v1  ;;  %897 = vmatprep.mubr.msk.bf16.mxu0 %vm1255_vm0, %v1254_v2  ;;  %v1030_v8 = vld [vmem:[%s1471_s11 + $0x20] sm:$0xff]   ;;  %v1036_v9 = vld [vmem:[%s1471_s11 + $0x50] sm:$0xff]   ;;  %v1031_v10 = vld [vmem:[%s1471_s11 + $0x28] sm:$0xff]   ;;  %v1522_v21 = vshrl.u32 %v320_v20, 7  ;;  %s721_s28 = sshll.u32 %s1256_s25, 4  ;;  %s722_s28 = int_to_ptr.vmem [resolvable:$true] %s721_s28 }
  0x91   : > { %883 = vmatprep.subr.bf16.mxu0 %v1254_v2  ;;  %917 = vmatprep.mubr.msk.bf16.mxu1 %vm1255_vm0, %v1254_v2  ;;  %v1037_v11 = vld [vmem:[%s1471_s11 + $0x58] sm:$0xff]   ;;  %v1032_v12 = vld [vmem:[%s1471_s11 + $0x30] sm:$0xff]   ;;  %v1038_v13 = vld [vmem:[%s1471_s11 + $0x60] sm:$0xff]   ;;  %s1174_s15 = scalar_lea.vmem %s722_s28, 128  ;;  %p1181_p6 = scmp.lt.s32.totalorder %s722_s28, %s722_s28 }
  0x92   : > { %902 = vmatpush3.bf16.msra.mxu1 %v1034_v5  ;;  %v1033_v14 = vld [vmem:[%s1471_s11 + $0x38] sm:$0xff]   ;;  %v268_v15 = vld [vmem:[#allocation9] sm:$0xff]  ;;  %v1039_v16 = vld [vmem:[%s1471_s11 + $0x68] sm:$0xff]   ;;  %v322_v22 = vsub.s32 0, %v1522_v21  ;;  %v416_v32 = vsub.s32 1, %v1522_v21  ;;  %v530_v61 = vsub.s32 2, %v1522_v21  ;;  %p1175_p0 = scmp.ne.s32.totalorder %s722_s28, %s1174_s15  ;;  %p1182_p11 = scmp.lt.s32.totalorder %s1174_s15, %s1174_s15 }
  0x93   : > { %903 = vmatprep.subr.bf16.mxu1 %v1254_v2  ;;  %v319_v17 = vpack.c.bf16 %v268_v15, %v268_v15  ;;  %v1040_v18 = vld [vmem:[%s1471_s11 + $0x70] sm:$0xff]   ;;  %v1041_v19 = vld [vmem:[%s1471_s11 + $0x78] sm:$0xff]   ;;  %v1527_v23 = vld [vmem:[%s236_s10] sm:$0xff]  ;;  %v535_v62 = vsub.s32 3, %v1522_v21 }
  0x94   : > { %884 = vmatpush3.bf16.msra.mxu0 %v1027_v3  ;;  %v323_v24 = vrot.slane %v1527_v23, %v322_v22  ;;  %v417_v33 = vrot.slane %v1527_v23, %v416_v32  ;;  %v1042_v41 = vld [vmem:[%s1471_s11 + $0x80] sm:$0xff]   ;;  %v1043_v42 = vld [vmem:[%s1471_s11 + $0x88] sm:$0xff]   ;;  %v1044_v43 = vld [vmem:[%s1471_s11 + $0x90] sm:$0xff]   ;;  %v531_v0 = vrot.slane %v1527_v23, %v530_v61  ;;  %p1176_p8 = pnand %p1175_p0, %p985_p4  ;;  %p1183_p13 = por %p1182_p11, %p1181_p6 }
  0x95   : > { %885 = vmatprep.subr.bf16.mxu0 %v1254_v2  ;;  %v1045_v44 = vld [vmem:[%s1471_s11 + $0x98] sm:$0xff]   ;;  %v1046_v45 = vld [vmem:[%s1471_s11 + $0xa0] sm:$0xff]   ;;  %v1047_v46 = vld [vmem:[%s1471_s11 + $0xa8] sm:$0xff]   ;;  %v536_v3 = vrot.slane %v1527_v23, %v535_v62 }
  0x96   : > { %904 = vmatpush3.bf16.msra.mxu1 %v1035_v7  ;;  %v1048_v47 = vld [vmem:[%s1471_s11 + $0xb0] sm:$0xff]   ;;  %p1177_p2 = pneg %p1176_p8 }
  0x97   : > { %905 = vmatprep.subr.bf16.mxu1 %v1254_v2 }
  0x98   : > { %886 = vmatpush3.bf16.msra.mxu0 %v1028_v4  ;;  %p1184_p7 = pnand %p1183_p13, %p1177_p2 }
  0x99   : > { %887 = vmatprep.subr.bf16.mxu0 %v1254_v2 }
  0x9a   : > { %906 = vmatpush3.bf16.msra.mxu1 %v1036_v9  ;;  %v1049_v9 = vld [vmem:[%s1471_s11 + $0xb8] sm:$0xff]  }
  0x9b   : > { %907 = vmatprep.subr.bf16.mxu1 %v1254_v2 }
  0x9c   : > { %888 = vmatpush3.bf16.msra.mxu0 %v1029_v6 }
  0x9d   : > { %889 = vmatprep.subr.bf16.mxu0 %v1254_v2 }
  0x9e   : > { %908 = vmatpush3.bf16.msra.mxu1 %v1037_v11 }
  0x9f   : > { %909 = vmatprep.subr.bf16.mxu1 %v1254_v2 }
  0xa0   : > { %890 = vmatpush3.bf16.msra.mxu0 %v1030_v8  ;;  %v269_v8 = vld [vmem:[#allocation5] sm:$0xf] }
  0xa1   : > { %891 = vmatprep.subr.bf16.mxu0 %v1254_v2 }
  0xa2   : > { %910 = vmatpush3.bf16.msra.mxu1 %v1038_v13 }
  0xa3   : > { %911 = vmatprep.subr.bf16.mxu1 %v1254_v2 }
  0xa4   : > { %892 = vmatpush3.bf16.msra.mxu0 %v1031_v10 }
  0xa5   : > { %893 = vmatprep.subr.bf16.mxu0 %v1254_v2 }
  0xa6   : > { %912 = vmatpush3.bf16.msra.mxu1 %v1039_v16 }
  0xa7   : > { %913 = vmatprep.subr.bf16.mxu1 %v1254_v2 }
  0xa8   : > { %894 = vmatpush3.bf16.msra.mxu0 %v1032_v12 }
  0xa9   : > { %895 = vmatprep.subr.bf16.mxu0 %v1254_v2 }
  0xaa   : > { %914 = vmatpush3.bf16.msra.mxu1 %v1040_v18 }
  0xab   : > { %915 = vmatprep.subr.bf16.mxu1 %v1254_v2 }
  0xac   : > { %896 = vmatpush3.bf16.msra.mxu0 %v1033_v14 }
  0xad   : > { %921 = vmatprep.subr.bf16.mxu0 %v1254_v2 }
  0xae   : > { %916 = vmatpush3.bf16.msra.mxu1 %v1041_v19 }
  0xaf   : > { %898 = vmatmul.mubr.bf16.vlgmr.msra.gmra.mrb[0].mxu0 %v319_v17  ;;  %927 = vmatprep.subr.bf16.mxu1 %v1254_v2 }
  0xb0   : > { %923 = vmatprep.mubr.msk.bf16.mxu0 %vm1255_vm0, %v1254_v2 }
 0x182   : > { %v406_v25 = vpop.f32.mrb[0].mxu0 }
 0x183   : > { %v407_v26 = vadd.f32 %v406_v25, %v323_v24  ;;  %v899_v27 = vpop.f32.mrb[1].mxu0 }
 0x184   : > { %v409_v28 = vpop.f32.mrb[2].mxu0 }
 0x185   : > { %v412_v29 = vmax.f32 %v407_v26, 0.0  ;;  %v900_v30 = vpop.f32.mrb[3].mxu0 }
 0x187   : > { %v413_v31 = vpack.c.bf16 %v412_v29, %v412_v29 }
 0x189   : > { %918 = vmatmul.mubr.bf16.vlgmr.msra.gmra.mrb[0].mxu1 %v413_v31 }
 0x18a   : > { %943 = vmatprep.mubr.msk.bf16.mxu1 %vm1255_vm0, %v1254_v2  ;;  %928 = vmatpush3.bf16.msra.mxu1 %v1042_v41  ;;  %v710_v41 = vsub.s32 6, %v1522_v21 }
 0x18b   : > { %929 = vmatprep.subr.bf16.mxu1 %v1254_v2 }
 0x18e   : > { %930 = vmatpush3.bf16.msra.mxu1 %v1043_v42 }
 0x18f   : > { %931 = vmatprep.subr.bf16.mxu1 %v1254_v2 }
 0x192   : > { %932 = vmatpush3.bf16.msra.mxu1 %v1044_v43 }
 0x193   : > { %933 = vmatprep.subr.bf16.mxu1 %v1254_v2 }
 0x196   : > { %934 = vmatpush3.bf16.msra.mxu1 %v1045_v44 }
 0x197   : > { %935 = vmatprep.subr.bf16.mxu1 %v1254_v2 }
 0x19a   : > { %936 = vmatpush3.bf16.msra.mxu1 %v1046_v45 }
 0x19b   : > { %937 = vmatprep.subr.bf16.mxu1 %v1254_v2 }
 0x19e   : > { %938 = vmatpush3.bf16.msra.mxu1 %v1047_v46  ;;  %v711_v46 = vrot.slane %v1527_v23, %v710_v41 }
 0x19f   : > { %939 = vmatprep.subr.bf16.mxu1 %v1254_v2 }
 0x1a2   : > { %940 = vmatpush3.bf16.msra.mxu1 %v1048_v47 }
 0x1a3   : > { %941 = vmatprep.subr.bf16.mxu1 %v1254_v2 }
 0x1a6   : > { %942 = vmatpush3.bf16.msra.mxu1 %v1049_v9 }
 0x25c   : > { %v500_v34 = vpop.f32.mrb[0].mxu1 }
 0x25d   : > { %v501_v35 = vadd.f32 %v500_v34, %v417_v33  ;;  %v919_v36 = vpop.f32.mrb[1].mxu1 }
 0x25e   : > { %v503_v37 = vpop.f32.mrb[2].mxu1 }
 0x25f   : > { %v506_v38 = vadd.f32 %v501_v35, %v268_v15  ;;  %v920_v39 = vpop.f32.mrb[3].mxu1  ;;  %v590_v15 = vsub.s32 4, %v1522_v21 }
 0x261   : > { %507 = vadd.xlane.f32.xlu0 %v506_v38  ;;  %v510_v40 = vmul.f32 %v506_v38, %v506_v38  ;;  %v591_v16 = vrot.slane %v1527_v23, %v590_v15 }
 0x265   : > { %511 = vadd.xlane.f32.xlu0 %v510_v40  ;;  %v705_v40 = vsub.s32 5, %v1522_v21 }
 0x267   : > { %v706_v43 = vrot.slane %v1527_v23, %v705_v40 }
 0x2ee   : > { %v508_v48 = vpop.xlane.xlu0 %507 }
 0x2ef   : > { %v509_v49 = vmul.f32 0.03125, %v508_v48 }
 0x2f1   : > { %v514_v51 = vmul.f32 %v509_v49, %v509_v49  ;;  %v526_v63 = vsub.f32 %v506_v38, %v509_v49 }
 0x2f2   : > { %v512_v50 = vpop.xlane.xlu0 %511 }
 0x2f3   : > { %v513_v52 = vmul.f32 0.03125, %v512_v50 }
 0x2f5   : > { %v515_v53 = vsub.f32 %v513_v52, %v514_v51 }
 0x2f7   : > { %v516_v54 = vmax.f32 %v515_v53, 0.0 }
 0x2f9   : > { %1050 = vrsqrt.f32 %v516_v54  ;;  %vm519_vm1 = vcmp.eq.f32.partialorder %v516_v54, inf  ;;  %v522_v57 = vand.u32 2147483648, %v516_v54  ;;  %vm521_vm2 = vcmp.eq.f32.partialorder %v516_v54, 0.0 }
 0x303   : > { %v1051_v55 = vpop.eup %1050 }
 0x304   : > { %v518_v56 = vmul.f32 %v1051_v55, %v516_v54 }
 0x306   : > { %v520_v58 = vsel %vm519_vm1, %v516_v54, %v518_v56 }
 0x307   : > { %v523_v59 = vsel %vm521_vm2, %v522_v57, %v520_v58 }
 0x308   : > { %v524_v60 = vadd.f32 1e-06, %v523_v59 }
 0x30a   : > { %1052 = vrcp.f32 %v524_v60 }
 0x314   : > { %v1053_v1 = vpop.eup %1052 }
 0x315   : > { %v527_v2 = vmul.f32 %v1053_v1, %v526_v63 }
 0x317   : > { %v532_v4 = vmul.f32 %v531_v0, %v527_v2 }
 0x319   : > { %v537_v5 = vadd.f32 %v536_v3, %v532_v4 }
 0x31b   : > { %v538_v6 = vpack.c.bf16 %v537_v5, %v537_v5 }
 0x31d   : > { %v545_v7 = vsel %vm543_vm3, %v538_v6, 0 }
 0x31e   : > { %922 = vmatpush3.bf16.msra.mxu0 %v545_v7 }
 0x321   : > { %924 = vmatmul.mubr.msk.bf16.vlgmr.msra.gmra.mrb[4].mxu0 %vm539_vm4, %v269_v8 }
 0x3f4   : > { %v581_v10 = vpop.f32.mrb[4].mxu0 }
 0x3f5   : > { %v587_v11 = vpack.c.bf16 %v581_v10, %v581_v10  ;;  %v925_v12 = vpop.f32.mrb[5].mxu0 }
 0x3f6   : > { %v584_v13 = vpop.f32.mrb[6].mxu0 }
 0x3f7   : > { %944 = vmatmul.mubr.bf16.vlgmr.msra.gmra.mrb[4].mxu1 %v587_v11  ;;  %v926_v14 = vpop.f32.mrb[7].mxu0 }
 0x4ca   : > { %v674_v17 = vpop.f32.mrb[4].mxu1 }
 0x4cb   : > { %v675_v18 = vadd.f32 %v674_v17, %v591_v16  ;;  %v945_v19 = vpop.f32.mrb[5].mxu1 }
 0x4cc   : > { %v677_v20 = vpop.f32.mrb[6].mxu1 }
 0x4cd   : > { %v680_v22 = vmax.f32 %v675_v18, 0.0  ;;  %v946_v24 = vpop.f32.mrb[7].mxu1 }
 0x4cf   : > { %v681_v25 = vadd.f32 %v680_v22, %v537_v5 }
 0x4d1   : > { %682 = vadd.xlane.f32.xlu1 %v681_v25  ;;  %v685_v26 = vmul.f32 %v681_v25, %v681_v25 }
 0x4d5   : > { %686 = vadd.xlane.f32.xlu1 %v685_v26 }
 0x55e   : > { %v683_v27 = vpop.xlane.xlu1 %682 }
 0x55f   : > { %v684_v28 = vmul.f32 0.03125, %v683_v27 }
 0x561   : > { %v689_v30 = vmul.f32 %v684_v28, %v684_v28  ;;  %v701_v42 = vsub.f32 %v681_v25, %v684_v28 }
 0x562   : > { %v687_v29 = vpop.xlane.xlu1 %686 }
 0x563   : > { %v688_v31 = vmul.f32 0.03125, %v687_v29 }
 0x565   : > { %v690_v32 = vsub.f32 %v688_v31, %v689_v30 }
 0x567   : > { %v691_v33 = vmax.f32 %v690_v32, 0.0 }
 0x569   : > { %1054 = vrsqrt.f32 %v691_v33  ;;  %vm694_vm5 = vcmp.eq.f32.partialorder %v691_v33, inf  ;;  %v697_v36 = vand.u32 2147483648, %v691_v33  ;;  %vm696_vm6 = vcmp.eq.f32.partialorder %v691_v33, 0.0 }
 0x573   : > { %v1055_v34 = vpop.eup %1054 }
 0x574   : > { %v693_v35 = vmul.f32 %v1055_v34, %v691_v33 }
 0x576   : > { %v695_v37 = vsel %vm694_vm5, %v691_v33, %v693_v35 }
 0x577   : > { %v698_v38 = vsel %vm696_vm6, %v697_v36, %v695_v37 }
 0x578   : > { %v699_v39 = vadd.f32 1e-06, %v698_v38 }
 0x57a   : > { %1056 = vrcp.f32 %v699_v39 }
 0x584   : > { %v1057_v44 = vpop.eup %1056 }
 0x585   : > { %v702_v45 = vmul.f32 %v1057_v44, %v701_v42 }
 0x587   : > { %v707_v47 = vmul.f32 %v706_v43, %v702_v45 }
 0x589   : > { %v712_v48 = vadd.f32 %v711_v46, %v707_v47 }
 0x58b   : > { %713 = vst [vmem:[#allocation9] sm:$0xff] %v712_v48 }
 0x58c   : > { %1187 = shalt.err (!%p1184_p7)
}
 0x58d   : > { %s1188_s30 = scalar_lea.hbm %s1599_s4, 128 }
 0x58e   : > { %p1189_p12 = scmp.ne.s32.totalorder %s1599_s4, %s1188_s30  ;;  %p1194_p1 = scmp.lt.u32.totalorder %s1188_s30, %s1599_s4 }
 0x590   : > { %p1190_p5 = pnand %p1189_p12, %p985_p4 }
 0x592   : > { %p1191_p10 = pneg %p1190_p5 }
 0x594   : > { %p1196_p9 = pnand %p1194_p1, %p1191_p10 }
 0x596   : > { %1199 = shalt.err (!%p1196_p9)
}
 0x597   : > { %963 = dma.vmem_to_hbm [thread:$0]  (%p985_p4), %s722_s28, 128, %s1599_s4, [#allocation4]  }
 0x598   : > { %1229 = dma.done.wait (%p985_p4), [#allocation4], 128  }
 0x599   : > { %1231 = vsyncadd (%p985_p4), [#allocation4], 4294967168 }
 0x59a PF: > { %p14_p3 = scmp.ge.s32.totalorder %s1304_s20, 4   ;;  %s1625_s15 = smov %s1238_s16 }
 0x59b   : > { %s1626_s16 = smov %s1242_s17  ;;  %s1627_s17 = smov %s1314_s23 }
 0x59c   : > { %s1628_s18 = smov %s1304_s20  ;;  %16 = sbr.rel (!%p14_p3) target bundleno = 4 (0x4), region = 95 }
 0x5a3   :  { %734 = vsyncpa [#allocation3], 1 }
 0x5a4   :  { %736 = vsyncpa [#allocation3 + $0x1], 1 }
 0x5a5   :  { %737 = vsyncpa [#allocation6], 1 }
 0x5a6   :  { %738 = vsyncpa [#allocation4], 1 }
 0x5a7   :  { %740 = vsyncpa [#allocation4 + $0x1], 1 }

</bundles_post_ra>
